<compile_context>
chip_gen: v6e
topology: v6e:2x2x1
jax: 0.10.0
libtpu: 0.0.40
codegen_flags: <defaults>
</compile_context>

<pallas_src>
import functools

import jax
import jax.numpy as jnp
from jax.experimental import pallas as pl
from jax.experimental.pallas import tpu as pltpu


def qlstm_dense_kernel(x_ref, wh_ref, wx_ref, b_ref, m_ref, k_ref,
                       wd_ref, bd_ref, out_ref, xg_ref, hs_ref,
                       *, seq_len, batch):
    """Whole QLSTM recurrence + dense head in one invocation.

    x_ref  : (S*B, I)   bf16, all time steps (time-major), flattened (S, B)
    wh_ref : (H, 4H)    bf16, hidden->gate weights (i/f/o cols pre-scaled 0.5)
    wx_ref : (I, 4H)    bf16, input->gate weights  (i/f/o cols pre-scaled 0.5)
    b_ref  : (1, 4H)    f32, gate biases           (i/f/o cols pre-scaled 0.5)
    m_ref  : (1, 4H)    f32, post-tanh scale  (0.5 for i/f/o slots, 1 for g)
    k_ref  : (1, 4H)    f32, post-tanh offset (0.5 for i/f/o slots, 0 for g)
    wd_ref : (H, 128)   f32, lane-padded dense head weight
    bd_ref : (1, 128)   f32, lane-padded dense head bias
    out_ref: (S*B, 128) f32, lane-padded output scores
    xg_ref : (S*B, 4H)  f32 scratch, input->gate projection for all steps
    hs_ref : (S*B, H)   f32 scratch, hidden states for all steps
    """
    H = wh_ref.shape[0]

    wh = wh_ref[...]                      # loaded once, reused every step
    gm = m_ref[...]                       # (1, 4H) hoisted gate-recovery FMA
    gk = k_ref[...]

    # Input->gate projection for every time step in one bf16 MXU pass:
    #   (S*B, I) @ (I, 4H) + b  ->  (S*B, 4H), staged in VMEM scratch.
    xg_ref[...] = jnp.dot(x_ref[...], wx_ref[...],
                          preferred_element_type=jnp.float32) + b_ref[...]

    def gate_split(gates):
        # One full-width tanh over the (B, 4H=128) vreg, then a single FMA
        # recovers sigmoid slots via sigmoid(x) = 0.5*tanh(x/2) + 0.5
        # (weights/bias were pre-scaled by 0.5 for the i/f/o columns).
        act = jnp.tanh(gates) * gm + gk
        return (act[:, 0 * H:1 * H], act[:, 1 * H:2 * H],
                act[:, 2 * H:3 * H], act[:, 3 * H:4 * H])

    # ---- t = 0: h is the zero init, so gates == xg[0:B] and c = i*g. ------
    i_g, f_g, g_g, o_g = gate_split(xg_ref[pl.ds(0, batch), :])
    c = i_g * g_g
    h = o_g * jnp.tanh(c)
    hs_ref[pl.ds(0, batch), :] = h

    # ---- t = 1 .. S-1: unrolled serial recurrence (seq_len is static). ----
    for t in range(1, seq_len):
        gates = (jnp.dot(h.astype(jnp.bfloat16), wh,
                         preferred_element_type=jnp.float32)
                 + xg_ref[pl.ds(t * batch, batch), :])        # (B, 4H)
        i_g, f_g, g_g, o_g = gate_split(gates)
        c = f_g * c + i_g * g_g
        h = o_g * jnp.tanh(c)
        hs_ref[pl.ds(t * batch, batch), :] = h

    # Dense head over all hidden states at once: (S*B, H) @ (H, 128) + bd,
    # lane-dense single store (true target_size columns sliced in wrapper).
    out_ref[...] = (jnp.dot(hs_ref[...], wd_ref[...],
                            preferred_element_type=jnp.float32)
                    + bd_ref[...]).astype(out_ref.dtype)


def quantum_model_forward(x, w_gates, b_gates, w_dense, b_dense):
    """x: (S, B, I) f32  ->  out_scores: (S, B, T) f32 (time-major)."""
    S, B, I = x.shape
    HI, H4 = w_gates.shape
    H = H4 // 4
    assert HI == H + I
    T = w_dense.shape[1]

    # Pad batch to a multiple of 8 so per-step tiles fill all vreg sublanes;
    # padded rows see bias-only activations and are dropped after the call.
    B_pad = max(8, ((B + 7) // 8) * 8)
    if B_pad != B:
        x = jnp.pad(x, ((0, 0), (0, B_pad - B), (0, 0)))

    # Split the stacked gate weight (concat order is [h, x]) so the kernel can
    # compute h @ W_h + x @ W_x instead of concatenating [h, x] every step.
    w_h = w_gates[:H, :]                  # (H, 4H)
    w_x = w_gates[H:, :]                  # (I, 4H)

    # sigmoid(x) = 0.5*tanh(x/2) + 0.5: pre-scale the i/f/o gate columns
    # (every slot except g) by 0.5 so the kernel runs ONE full-width tanh per
    # step and recovers all four gates with a single FMA.
    half = jnp.full((1, H), 0.5, jnp.float32)
    one = jnp.ones((1, H), jnp.float32)
    zero = jnp.zeros((1, H), jnp.float32)
    col_scale = jnp.concatenate([half, half, one, half], axis=1)   # (1, 4H)
    gate_m = col_scale                                             # (1, 4H)
    gate_k = jnp.concatenate([half, half, zero, half], axis=1)     # (1, 4H)

    w_h = (w_h * col_scale).astype(jnp.bfloat16)      # bf16 MXU feeds;
    w_x = (w_x * col_scale).astype(jnp.bfloat16)      # f32 accumulation/state
    b_g = (b_gates * col_scale).astype(jnp.float32)
    x2d = x.reshape(S * B_pad, I).astype(jnp.bfloat16)

    # Lane-pad the dense head to 128 output lanes -> unmasked full-width store.
    T_pad = 128
    wd = jnp.zeros((H, T_pad), jnp.float32).at[:, :T].set(w_dense)
    bd = jnp.zeros((1, T_pad), jnp.float32).at[:, :T].set(b_dense)

    # Everything (x, weights, states) fits comfortably in VMEM on v5e/v6e/v7x,
    # so a single un-gridded invocation with whole-array VMEM blocks is used.
    out2d = pl.pallas_call(
        functools.partial(qlstm_dense_kernel, seq_len=S, batch=B_pad),
        out_shape=jax.ShapeDtypeStruct((S * B_pad, T_pad), jnp.float32),
        in_specs=[pl.BlockSpec(memory_space=pltpu.MemorySpace.VMEM)] * 8,
        out_specs=pl.BlockSpec(memory_space=pltpu.MemorySpace.VMEM),
        scratch_shapes=[
            pltpu.VMEM((S * B_pad, H4), jnp.float32),   # xg: x->gate proj
            pltpu.VMEM((S * B_pad, H), jnp.float32),    # hs: hidden states
        ],
    )(x2d, w_h, w_x, b_g, gate_m, gate_k, wd, bd)

    out = out2d[:, :T].reshape(S, B_pad, T)
    return out[:, :B, :]


def reference_forward(x, w_gates, b_gates, w_dense, b_dense):
    """Pure-JAX f32 reference of the same QLSTM skeleton + dense head."""
    S, B, I = x.shape
    H = w_gates.shape[1] // 4

    def step(carry, x_t):
        h, c = carry
        v = jnp.concatenate([h, x_t], axis=1)
        gates = v @ w_gates + b_gates[0]
        i_g = jax.nn.sigmoid(gates[:, 0 * H:1 * H])
        f_g = jax.nn.sigmoid(gates[:, 1 * H:2 * H])
        g_g = jnp.tanh(gates[:, 2 * H:3 * H])
        o_g = jax.nn.sigmoid(gates[:, 3 * H:4 * H])
        c_new = f_g * c + i_g * g_g
        h_new = o_g * jnp.tanh(c_new)
        return (h_new, c_new), h_new

    h0 = jnp.zeros((B, H), jnp.float32)
    c0 = jnp.zeros((B, H), jnp.float32)
    _, hs = jax.lax.scan(step, (h0, c0), x)          # (S, B, H)
    return hs @ w_dense + b_dense[0]                 # (S, B, T)


if __name__ == "__main__":
    # Small shapes consistent with the module's constructor:
    #   n_qubits=4, input_size=4, num_hiddens=32, batch_size=4, target_size=3
    n_qubits = 4            # absorbed into the gate parameterization
    input_size = 4
    num_hiddens = 32
    batch_size = 4
    target_size = 3
    seq_len = 8

    key = jax.random.PRNGKey(0)
    kx, kw, kb, kwd, kbd = jax.random.split(key, 5)

    x = jax.random.normal(kx, (seq_len, batch_size, input_size), jnp.float32)

    # Deterministic "quantum-circuit" gate parameters (classical skeleton).
    w_gates = 0.1 * jax.random.normal(
        kw, (num_hiddens + input_size, 4 * num_hiddens), jnp.float32)
    b_gates = 0.1 * jax.random.normal(kb, (1, 4 * num_hiddens), jnp.float32)
    # nn.Linear(num_hiddens, target_size)
    w_dense = 0.1 * jax.random.normal(kwd, (num_hiddens, target_size), jnp.float32)
    b_dense = 0.1 * jax.random.normal(kbd, (1, target_size), jnp.float32)

    out = quantum_model_forward(x, w_gates, b_gates, w_dense, b_dense)
    out = jax.block_until_ready(out)

    ref = reference_forward(x, w_gates, b_gates, w_dense, b_dense)
    assert out.shape == (seq_len, batch_size, target_size)
    # Tolerance loosened vs the f32 reference: the kernel feeds the MXU bf16
    # operands (f32 accumulation/state), which perturbs the recurrence by a
    # few 1e-3 at these magnitudes.
    assert jnp.allclose(out, ref, atol=3e-2, rtol=3e-2), "mismatch vs reference"

    print("KERNEL_OK")
</pallas_src>

<mosaic_0001>
module attributes {stable_mosaic.version = 11 : i64} {
  func.func @qlstm_dense_kernel(%arg0: memref<64x4xbf16, #tpu.memory_space<vmem>>, %arg1: memref<32x128xbf16, #tpu.memory_space<vmem>>, %arg2: memref<4x128xbf16, #tpu.memory_space<vmem>>, %arg3: memref<1x128xf32, #tpu.memory_space<vmem>>, %arg4: memref<1x128xf32, #tpu.memory_space<vmem>>, %arg5: memref<1x128xf32, #tpu.memory_space<vmem>>, %arg6: memref<32x128xf32, #tpu.memory_space<vmem>>, %arg7: memref<1x128xf32, #tpu.memory_space<vmem>>, %arg8: memref<64x128xf32, #tpu.memory_space<vmem>>, %arg9: memref<64x128xf32, #tpu.memory_space<vmem>>, %arg10: memref<64x32xf32, #tpu.memory_space<vmem>>) attributes {dimension_semantics = [], scalar_prefetch = 0 : i64, scratch_operands = 2 : i64, tpu.core_type = #tpu.core_type<tc>} {
    %c0 = arith.constant 0 : index
    %c0_0 = arith.constant 0 : index
    %0 = vector.load %arg1[%c0, %c0_0] : memref<32x128xbf16, #tpu.memory_space<vmem>>, vector<32x128xbf16>
    %c0_1 = arith.constant 0 : index
    %c0_2 = arith.constant 0 : index
    %1 = vector.load %arg4[%c0_1, %c0_2] : memref<1x128xf32, #tpu.memory_space<vmem>>, vector<1x128xf32>
    %c0_3 = arith.constant 0 : index
    %c0_4 = arith.constant 0 : index
    %2 = vector.load %arg5[%c0_3, %c0_4] : memref<1x128xf32, #tpu.memory_space<vmem>>, vector<1x128xf32>
    %c0_5 = arith.constant 0 : index
    %c0_6 = arith.constant 0 : index
    %3 = vector.load %arg0[%c0_5, %c0_6] : memref<64x4xbf16, #tpu.memory_space<vmem>>, vector<64x4xbf16>
    %c0_7 = arith.constant 0 : index
    %c0_8 = arith.constant 0 : index
    %4 = vector.load %arg2[%c0_7, %c0_8] : memref<4x128xbf16, #tpu.memory_space<vmem>>, vector<4x128xbf16>
    %cst = arith.constant dense<0.000000e+00> : vector<64x128xf32>
    %5 = tpu.matmul %3, %4, %cst {dimension_numbers = #tpu.dot_dimension_numbers<[1], [0], [0], [1], [0, 0, 1, 1], [], []>} : vector<64x4xbf16>, vector<4x128xbf16>, vector<64x128xf32> -> vector<64x128xf32>
    %c0_9 = arith.constant 0 : index
    %c0_10 = arith.constant 0 : index
    %6 = vector.load %arg3[%c0_9, %c0_10] : memref<1x128xf32, #tpu.memory_space<vmem>>, vector<1x128xf32>
    %7 = vector.broadcast %6 : vector<1x128xf32> to vector<64x128xf32>
    %8 = arith.addf %5, %7 : vector<64x128xf32>
    %c0_11 = arith.constant 0 : index
    %c0_12 = arith.constant 0 : index
    %9 = vector.load %arg9[%c0_11, %c0_12] : memref<64x128xf32, #tpu.memory_space<vmem>>, vector<64x128xf32>
    tpu.vector_store %arg9[%c0_11, %c0_12], %8 {strides = array<i32>} : memref<64x128xf32, #tpu.memory_space<vmem>>, vector<64x128xf32>,
    %c0_13 = arith.constant 0 : index
    %c0_14 = arith.constant 0 : index
    %10 = vector.load %arg9[%c0_13, %c0_14] : memref<64x128xf32, #tpu.memory_space<vmem>>, vector<8x128xf32>
    %11 = math.tanh %10 : vector<8x128xf32>
    %12 = vector.broadcast %1 : vector<1x128xf32> to vector<8x128xf32>
    %13 = arith.mulf %11, %12 : vector<8x128xf32>
    %14 = vector.broadcast %2 : vector<1x128xf32> to vector<8x128xf32>
    %15 = arith.addf %13, %14 : vector<8x128xf32>
    %16 = vector.extract_strided_slice %15 {offsets = [0, 0], sizes = [8, 32], strides = [1, 1]} : vector<8x128xf32> to vector<8x32xf32>
    %17 = vector.extract_strided_slice %15 {offsets = [0, 64], sizes = [8, 32], strides = [1, 1]} : vector<8x128xf32> to vector<8x32xf32>
    %18 = vector.extract_strided_slice %15 {offsets = [0, 96], sizes = [8, 32], strides = [1, 1]} : vector<8x128xf32> to vector<8x32xf32>
    %19 = arith.mulf %16, %17 : vector<8x32xf32>
    %20 = math.tanh %19 : vector<8x32xf32>
    %21 = arith.mulf %18, %20 : vector<8x32xf32>
    %c0_15 = arith.constant 0 : index
    %c0_16 = arith.constant 0 : index
    %22 = vector.load %arg10[%c0_15, %c0_16] : memref<64x32xf32, #tpu.memory_space<vmem>>, vector<8x32xf32>
    tpu.vector_store %arg10[%c0_15, %c0_16], %21 {strides = array<i32>} : memref<64x32xf32, #tpu.memory_space<vmem>>, vector<8x32xf32>,
    %23 = arith.truncf %21 : vector<8x32xf32> to vector<8x32xbf16>
    %cst_17 = arith.constant dense<0.000000e+00> : vector<8x128xf32>
    %24 = tpu.matmul %23, %0, %cst_17 {dimension_numbers = #tpu.dot_dimension_numbers<[1], [0], [0], [1], [0, 0, 1, 1], [], []>} : vector<8x32xbf16>, vector<32x128xbf16>, vector<8x128xf32> -> vector<8x128xf32>
    %c8 = arith.constant 8 : index
    %c0_18 = arith.constant 0 : index
    %25 = vector.load %arg9[%c8, %c0_18] : memref<64x128xf32, #tpu.memory_space<vmem>>, vector<8x128xf32>
    %26 = arith.addf %24, %25 : vector<8x128xf32>
    %27 = math.tanh %26 : vector<8x128xf32>
    %28 = vector.broadcast %1 : vector<1x128xf32> to vector<8x128xf32>
    %29 = arith.mulf %27, %28 : vector<8x128xf32>
    %30 = vector.broadcast %2 : vector<1x128xf32> to vector<8x128xf32>
    %31 = arith.addf %29, %30 : vector<8x128xf32>
    %32 = vector.extract_strided_slice %31 {offsets = [0, 0], sizes = [8, 32], strides = [1, 1]} : vector<8x128xf32> to vector<8x32xf32>
    %33 = vector.extract_strided_slice %31 {offsets = [0, 32], sizes = [8, 32], strides = [1, 1]} : vector<8x128xf32> to vector<8x32xf32>
    %34 = vector.extract_strided_slice %31 {offsets = [0, 64], sizes = [8, 32], strides = [1, 1]} : vector<8x128xf32> to vector<8x32xf32>
    %35 = vector.extract_strided_slice %31 {offsets = [0, 96], sizes = [8, 32], strides = [1, 1]} : vector<8x128xf32> to vector<8x32xf32>
    %36 = arith.mulf %33, %19 : vector<8x32xf32>
    %37 = arith.mulf %32, %34 : vector<8x32xf32>
    %38 = arith.addf %36, %37 : vector<8x32xf32>
    %39 = math.tanh %38 : vector<8x32xf32>
    %40 = arith.mulf %35, %39 : vector<8x32xf32>
    %c8_19 = arith.constant 8 : index
    %c0_20 = arith.constant 0 : index
    %41 = vector.load %arg10[%c8_19, %c0_20] : memref<64x32xf32, #tpu.memory_space<vmem>>, vector<8x32xf32>
    tpu.vector_store %arg10[%c8_19, %c0_20], %40 {strides = array<i32>} : memref<64x32xf32, #tpu.memory_space<vmem>>, vector<8x32xf32>,
    %42 = arith.truncf %40 : vector<8x32xf32> to vector<8x32xbf16>
    %cst_21 = arith.constant dense<0.000000e+00> : vector<8x128xf32>
    %43 = tpu.matmul %42, %0, %cst_21 {dimension_numbers = #tpu.dot_dimension_numbers<[1], [0], [0], [1], [0, 0, 1, 1], [], []>} : vector<8x32xbf16>, vector<32x128xbf16>, vector<8x128xf32> -> vector<8x128xf32>
    %c16 = arith.constant 16 : index
    %c0_22 = arith.constant 0 : index
    %44 = vector.load %arg9[%c16, %c0_22] : memref<64x128xf32, #tpu.memory_space<vmem>>, vector<8x128xf32>
    %45 = arith.addf %43, %44 : vector<8x128xf32>
    %46 = math.tanh %45 : vector<8x128xf32>
    %47 = vector.broadcast %1 : vector<1x128xf32> to vector<8x128xf32>
    %48 = arith.mulf %46, %47 : vector<8x128xf32>
    %49 = vector.broadcast %2 : vector<1x128xf32> to vector<8x128xf32>
    %50 = arith.addf %48, %49 : vector<8x128xf32>
    %51 = vector.extract_strided_slice %50 {offsets = [0, 0], sizes = [8, 32], strides = [1, 1]} : vector<8x128xf32> to vector<8x32xf32>
    %52 = vector.extract_strided_slice %50 {offsets = [0, 32], sizes = [8, 32], strides = [1, 1]} : vector<8x128xf32> to vector<8x32xf32>
    %53 = vector.extract_strided_slice %50 {offsets = [0, 64], sizes = [8, 32], strides = [1, 1]} : vector<8x128xf32> to vector<8x32xf32>
    %54 = vector.extract_strided_slice %50 {offsets = [0, 96], sizes = [8, 32], strides = [1, 1]} : vector<8x128xf32> to vector<8x32xf32>
    %55 = arith.mulf %52, %38 : vector<8x32xf32>
    %56 = arith.mulf %51, %53 : vector<8x32xf32>
    %57 = arith.addf %55, %56 : vector<8x32xf32>
    %58 = math.tanh %57 : vector<8x32xf32>
    %59 = arith.mulf %54, %58 : vector<8x32xf32>
    %c16_23 = arith.constant 16 : index
    %c0_24 = arith.constant 0 : index
    %60 = vector.load %arg10[%c16_23, %c0_24] : memref<64x32xf32, #tpu.memory_space<vmem>>, vector<8x32xf32>
    tpu.vector_store %arg10[%c16_23, %c0_24], %59 {strides = array<i32>} : memref<64x32xf32, #tpu.memory_space<vmem>>, vector<8x32xf32>,
    %61 = arith.truncf %59 : vector<8x32xf32> to vector<8x32xbf16>
    %cst_25 = arith.constant dense<0.000000e+00> : vector<8x128xf32>
    %62 = tpu.matmul %61, %0, %cst_25 {dimension_numbers = #tpu.dot_dimension_numbers<[1], [0], [0], [1], [0, 0, 1, 1], [], []>} : vector<8x32xbf16>, vector<32x128xbf16>, vector<8x128xf32> -> vector<8x128xf32>
    %c24 = arith.constant 24 : index
    %c0_26 = arith.constant 0 : index
    %63 = vector.load %arg9[%c24, %c0_26] : memref<64x128xf32, #tpu.memory_space<vmem>>, vector<8x128xf32>
    %64 = arith.addf %62, %63 : vector<8x128xf32>
    %65 = math.tanh %64 : vector<8x128xf32>
    %66 = vector.broadcast %1 : vector<1x128xf32> to vector<8x128xf32>
    %67 = arith.mulf %65, %66 : vector<8x128xf32>
    %68 = vector.broadcast %2 : vector<1x128xf32> to vector<8x128xf32>
    %69 = arith.addf %67, %68 : vector<8x128xf32>
    %70 = vector.extract_strided_slice %69 {offsets = [0, 0], sizes = [8, 32], strides = [1, 1]} : vector<8x128xf32> to vector<8x32xf32>
    %71 = vector.extract_strided_slice %69 {offsets = [0, 32], sizes = [8, 32], strides = [1, 1]} : vector<8x128xf32> to vector<8x32xf32>
    %72 = vector.extract_strided_slice %69 {offsets = [0, 64], sizes = [8, 32], strides = [1, 1]} : vector<8x128xf32> to vector<8x32xf32>
    %73 = vector.extract_strided_slice %69 {offsets = [0, 96], sizes = [8, 32], strides = [1, 1]} : vector<8x128xf32> to vector<8x32xf32>
    %74 = arith.mulf %71, %57 : vector<8x32xf32>
    %75 = arith.mulf %70, %72 : vector<8x32xf32>
    %76 = arith.addf %74, %75 : vector<8x32xf32>
    %77 = math.tanh %76 : vector<8x32xf32>
    %78 = arith.mulf %73, %77 : vector<8x32xf32>
    %c24_27 = arith.constant 24 : index
    %c0_28 = arith.constant 0 : index
    %79 = vector.load %arg10[%c24_27, %c0_28] : memref<64x32xf32, #tpu.memory_space<vmem>>, vector<8x32xf32>
    tpu.vector_store %arg10[%c24_27, %c0_28], %78 {strides = array<i32>} : memref<64x32xf32, #tpu.memory_space<vmem>>, vector<8x32xf32>,
    %80 = arith.truncf %78 : vector<8x32xf32> to vector<8x32xbf16>
    %cst_29 = arith.constant dense<0.000000e+00> : vector<8x128xf32>
    %81 = tpu.matmul %80, %0, %cst_29 {dimension_numbers = #tpu.dot_dimension_numbers<[1], [0], [0], [1], [0, 0, 1, 1], [], []>} : vector<8x32xbf16>, vector<32x128xbf16>, vector<8x128xf32> -> vector<8x128xf32>
    %c32 = arith.constant 32 : index
    %c0_30 = arith.constant 0 : index
    %82 = vector.load %arg9[%c32, %c0_30] : memref<64x128xf32, #tpu.memory_space<vmem>>, vector<8x128xf32>
    %83 = arith.addf %81, %82 : vector<8x128xf32>
    %84 = math.tanh %83 : vector<8x128xf32>
    %85 = vector.broadcast %1 : vector<1x128xf32> to vector<8x128xf32>
    %86 = arith.mulf %84, %85 : vector<8x128xf32>
    %87 = vector.broadcast %2 : vector<1x128xf32> to vector<8x128xf32>
    %88 = arith.addf %86, %87 : vector<8x128xf32>
    %89 = vector.extract_strided_slice %88 {offsets = [0, 0], sizes = [8, 32], strides = [1, 1]} : vector<8x128xf32> to vector<8x32xf32>
    %90 = vector.extract_strided_slice %88 {offsets = [0, 32], sizes = [8, 32], strides = [1, 1]} : vector<8x128xf32> to vector<8x32xf32>
    %91 = vector.extract_strided_slice %88 {offsets = [0, 64], sizes = [8, 32], strides = [1, 1]} : vector<8x128xf32> to vector<8x32xf32>
    %92 = vector.extract_strided_slice %88 {offsets = [0, 96], sizes = [8, 32], strides = [1, 1]} : vector<8x128xf32> to vector<8x32xf32>
    %93 = arith.mulf %90, %76 : vector<8x32xf32>
    %94 = arith.mulf %89, %91 : vector<8x32xf32>
    %95 = arith.addf %93, %94 : vector<8x32xf32>
    %96 = math.tanh %95 : vector<8x32xf32>
    %97 = arith.mulf %92, %96 : vector<8x32xf32>
    %c32_31 = arith.constant 32 : index
    %c0_32 = arith.constant 0 : index
    %98 = vector.load %arg10[%c32_31, %c0_32] : memref<64x32xf32, #tpu.memory_space<vmem>>, vector<8x32xf32>
    tpu.vector_store %arg10[%c32_31, %c0_32], %97 {strides = array<i32>} : memref<64x32xf32, #tpu.memory_space<vmem>>, vector<8x32xf32>,
    %99 = arith.truncf %97 : vector<8x32xf32> to vector<8x32xbf16>
    %cst_33 = arith.constant dense<0.000000e+00> : vector<8x128xf32>
    %100 = tpu.matmul %99, %0, %cst_33 {dimension_numbers = #tpu.dot_dimension_numbers<[1], [0], [0], [1], [0, 0, 1, 1], [], []>} : vector<8x32xbf16>, vector<32x128xbf16>, vector<8x128xf32> -> vector<8x128xf32>
    %c40 = arith.constant 40 : index
    %c0_34 = arith.constant 0 : index
    %101 = vector.load %arg9[%c40, %c0_34] : memref<64x128xf32, #tpu.memory_space<vmem>>, vector<8x128xf32>
    %102 = arith.addf %100, %101 : vector<8x128xf32>
    %103 = math.tanh %102 : vector<8x128xf32>
    %104 = vector.broadcast %1 : vector<1x128xf32> to vector<8x128xf32>
    %105 = arith.mulf %103, %104 : vector<8x128xf32>
    %106 = vector.broadcast %2 : vector<1x128xf32> to vector<8x128xf32>
    %107 = arith.addf %105, %106 : vector<8x128xf32>
    %108 = vector.extract_strided_slice %107 {offsets = [0, 0], sizes = [8, 32], strides = [1, 1]} : vector<8x128xf32> to vector<8x32xf32>
    %109 = vector.extract_strided_slice %107 {offsets = [0, 32], sizes = [8, 32], strides = [1, 1]} : vector<8x128xf32> to vector<8x32xf32>
    %110 = vector.extract_strided_slice %107 {offsets = [0, 64], sizes = [8, 32], strides = [1, 1]} : vector<8x128xf32> to vector<8x32xf32>
    %111 = vector.extract_strided_slice %107 {offsets = [0, 96], sizes = [8, 32], strides = [1, 1]} : vector<8x128xf32> to vector<8x32xf32>
    %112 = arith.mulf %109, %95 : vector<8x32xf32>
    %113 = arith.mulf %108, %110 : vector<8x32xf32>
    %114 = arith.addf %112, %113 : vector<8x32xf32>
    %115 = math.tanh %114 : vector<8x32xf32>
    %116 = arith.mulf %111, %115 : vector<8x32xf32>
    %c40_35 = arith.constant 40 : index
    %c0_36 = arith.constant 0 : index
    %117 = vector.load %arg10[%c40_35, %c0_36] : memref<64x32xf32, #tpu.memory_space<vmem>>, vector<8x32xf32>
    tpu.vector_store %arg10[%c40_35, %c0_36], %116 {strides = array<i32>} : memref<64x32xf32, #tpu.memory_space<vmem>>, vector<8x32xf32>,
    %118 = arith.truncf %116 : vector<8x32xf32> to vector<8x32xbf16>
    %cst_37 = arith.constant dense<0.000000e+00> : vector<8x128xf32>
    %119 = tpu.matmul %118, %0, %cst_37 {dimension_numbers = #tpu.dot_dimension_numbers<[1], [0], [0], [1], [0, 0, 1, 1], [], []>} : vector<8x32xbf16>, vector<32x128xbf16>, vector<8x128xf32> -> vector<8x128xf32>
    %c48 = arith.constant 48 : index
    %c0_38 = arith.constant 0 : index
    %120 = vector.load %arg9[%c48, %c0_38] : memref<64x128xf32, #tpu.memory_space<vmem>>, vector<8x128xf32>
    %121 = arith.addf %119, %120 : vector<8x128xf32>
    %122 = math.tanh %121 : vector<8x128xf32>
    %123 = vector.broadcast %1 : vector<1x128xf32> to vector<8x128xf32>
    %124 = arith.mulf %122, %123 : vector<8x128xf32>
    %125 = vector.broadcast %2 : vector<1x128xf32> to vector<8x128xf32>
    %126 = arith.addf %124, %125 : vector<8x128xf32>
    %127 = vector.extract_strided_slice %126 {offsets = [0, 0], sizes = [8, 32], strides = [1, 1]} : vector<8x128xf32> to vector<8x32xf32>
    %128 = vector.extract_strided_slice %126 {offsets = [0, 32], sizes = [8, 32], strides = [1, 1]} : vector<8x128xf32> to vector<8x32xf32>
    %129 = vector.extract_strided_slice %126 {offsets = [0, 64], sizes = [8, 32], strides = [1, 1]} : vector<8x128xf32> to vector<8x32xf32>
    %130 = vector.extract_strided_slice %126 {offsets = [0, 96], sizes = [8, 32], strides = [1, 1]} : vector<8x128xf32> to vector<8x32xf32>
    %131 = arith.mulf %128, %114 : vector<8x32xf32>
    %132 = arith.mulf %127, %129 : vector<8x32xf32>
    %133 = arith.addf %131, %132 : vector<8x32xf32>
    %134 = math.tanh %133 : vector<8x32xf32>
    %135 = arith.mulf %130, %134 : vector<8x32xf32>
    %c48_39 = arith.constant 48 : index
    %c0_40 = arith.constant 0 : index
    %136 = vector.load %arg10[%c48_39, %c0_40] : memref<64x32xf32, #tpu.memory_space<vmem>>, vector<8x32xf32>
    tpu.vector_store %arg10[%c48_39, %c0_40], %135 {strides = array<i32>} : memref<64x32xf32, #tpu.memory_space<vmem>>, vector<8x32xf32>,
    %137 = arith.truncf %135 : vector<8x32xf32> to vector<8x32xbf16>
    %cst_41 = arith.constant dense<0.000000e+00> : vector<8x128xf32>
    %138 = tpu.matmul %137, %0, %cst_41 {dimension_numbers = #tpu.dot_dimension_numbers<[1], [0], [0], [1], [0, 0, 1, 1], [], []>} : vector<8x32xbf16>, vector<32x128xbf16>, vector<8x128xf32> -> vector<8x128xf32>
    %c56 = arith.constant 56 : index
    %c0_42 = arith.constant 0 : index
    %139 = vector.load %arg9[%c56, %c0_42] : memref<64x128xf32, #tpu.memory_space<vmem>>, vector<8x128xf32>
    %140 = arith.addf %138, %139 : vector<8x128xf32>
    %141 = math.tanh %140 : vector<8x128xf32>
    %142 = vector.broadcast %1 : vector<1x128xf32> to vector<8x128xf32>
    %143 = arith.mulf %141, %142 : vector<8x128xf32>
    %144 = vector.broadcast %2 : vector<1x128xf32> to vector<8x128xf32>
    %145 = arith.addf %143, %144 : vector<8x128xf32>
    %146 = vector.extract_strided_slice %145 {offsets = [0, 0], sizes = [8, 32], strides = [1, 1]} : vector<8x128xf32> to vector<8x32xf32>
    %147 = vector.extract_strided_slice %145 {offsets = [0, 32], sizes = [8, 32], strides = [1, 1]} : vector<8x128xf32> to vector<8x32xf32>
    %148 = vector.extract_strided_slice %145 {offsets = [0, 64], sizes = [8, 32], strides = [1, 1]} : vector<8x128xf32> to vector<8x32xf32>
    %149 = vector.extract_strided_slice %145 {offsets = [0, 96], sizes = [8, 32], strides = [1, 1]} : vector<8x128xf32> to vector<8x32xf32>
    %150 = arith.mulf %147, %133 : vector<8x32xf32>
    %151 = arith.mulf %146, %148 : vector<8x32xf32>
    %152 = arith.addf %150, %151 : vector<8x32xf32>
    %153 = math.tanh %152 : vector<8x32xf32>
    %154 = arith.mulf %149, %153 : vector<8x32xf32>
    %c56_43 = arith.constant 56 : index
    %c0_44 = arith.constant 0 : index
    %155 = vector.load %arg10[%c56_43, %c0_44] : memref<64x32xf32, #tpu.memory_space<vmem>>, vector<8x32xf32>
    tpu.vector_store %arg10[%c56_43, %c0_44], %154 {strides = array<i32>} : memref<64x32xf32, #tpu.memory_space<vmem>>, vector<8x32xf32>,
    %c0_45 = arith.constant 0 : index
    %c0_46 = arith.constant 0 : index
    %156 = vector.load %arg10[%c0_45, %c0_46] : memref<64x32xf32, #tpu.memory_space<vmem>>, vector<64x32xf32>
    %c0_47 = arith.constant 0 : index
    %c0_48 = arith.constant 0 : index
    %157 = vector.load %arg6[%c0_47, %c0_48] : memref<32x128xf32, #tpu.memory_space<vmem>>, vector<32x128xf32>
    %cst_49 = arith.constant dense<0.000000e+00> : vector<64x128xf32>
    %158 = tpu.matmul %156, %157, %cst_49 {dimension_numbers = #tpu.dot_dimension_numbers<[1], [0], [0], [1], [0, 0, 1, 1], [], []>} : vector<64x32xf32>, vector<32x128xf32>, vector<64x128xf32> -> vector<64x128xf32>
    %c0_50 = arith.constant 0 : index
    %c0_51 = arith.constant 0 : index
    %159 = vector.load %arg7[%c0_50, %c0_51] : memref<1x128xf32, #tpu.memory_space<vmem>>, vector<1x128xf32>
    %160 = vector.broadcast %159 : vector<1x128xf32> to vector<64x128xf32>
    %161 = arith.addf %158, %160 : vector<64x128xf32>
    %c0_52 = arith.constant 0 : index
    %c0_53 = arith.constant 0 : index
    %162 = vector.load %arg8[%c0_52, %c0_53] : memref<64x128xf32, #tpu.memory_space<vmem>>, vector<64x128xf32>
    tpu.vector_store %arg8[%c0_52, %c0_53], %161 {strides = array<i32>} : memref<64x128xf32, #tpu.memory_space<vmem>>, vector<64x128xf32>,
    return
  }
}

</mosaic_0001>

<bundles_post_ra>
// kernel: tpu_custom_call.1
= control target key start
LH: loop header
LB: loop body
LE: loop exit
PB: predicated region body
PF: predicated region fallthrough
CT: control target
= control target key end

     0   :  { %13 = vsyncpa [#allocation5], 0  ;;  %s1447_s0 = inlined_call_operand.vmem [shape: bf16[64,4], index: 0, kind: input, shape index: {}]   ;;  %s1448_s1 = inlined_call_operand.hbm [shape: bf16[32,128], index: 1, kind: input, shape index: {}]   ;;  %s1449_s2 = inlined_call_operand.vmem [shape: bf16[4,128], index: 2, kind: input, shape index: {}]   ;;  %s1450_s3 = inlined_call_operand.vmem [shape: f32[1,128], index: 3, kind: input, shape index: {}]   ;;  %s1451_s4 = inlined_call_operand.vmem [shape: f32[1,128], index: 4, kind: input, shape index: {}]   ;;  %s1452_s5 = inlined_call_operand.vmem [shape: f32[1,128], index: 5, kind: input, shape index: {}]   ;;  %s1453_s6 = inlined_call_operand.vmem [shape: f32[32,128], index: 6, kind: input, shape index: {}]   ;;  %s1454_s7 = inlined_call_operand.vmem [shape: f32[1,128], index: 7, kind: input, shape index: {}]   ;;  %s1455_s8 = inlined_call_operand.hbm [shape: f32[64,128], index: 8, kind: output, shape index: {}]  }
   0x1   :  { %14 = vsyncpa [#allocation6], 0  ;;  %s1156_s27 = smov [#allocation4]  }
   0x2   :  { %s22_s28 = sshll.u32 %s1156_s27, 4  ;;  %s23_s28 = int_to_ptr.vmem [resolvable:$true] %s22_s28 }
   0x3   :  { %s1120_s29 = scalar_lea.vmem %s23_s28, 256  ;;  %p1125_p1 = scmp.lt.s32.totalorder %s23_s28, %s23_s28 }
   0x4   :  { %p1121_p0 = scmp.ne.s32.totalorder %s23_s28, %s1120_s29  ;;  %p1126_p2 = scmp.lt.s32.totalorder %s1120_s29, %s1120_s29 }
   0x6   :  { %p1127_p3 = por %p1126_p2, %p1125_p1 }
   0x8   :  { %p1128_p4 = pnand %p1127_p3, %p1121_p0 }
   0xa   :  { %1131 = shalt.err (!%p1128_p4)
}
   0xb   :  { %s1157_s30 = smov 64   ;;  %s1158_s9 = smov 4  }
   0xc   :  { %28 = dma.hbm_to_vmem [thread:$0]  %s1448_s1, 256, %s23_s28, [#allocation5], %s1157_s30, %s1157_s30, %s1158_s9  }
   0xd   :  { %1152 = dma.done.wait [#allocation5], 256  }
   0xe   :  { %1153 = vsyncadd [#allocation5], 4294967040  ;;  %vm100_vm0 = vcmask 1041408   ;;  %vm87_vm1 = vcmask 31744   ;;  %v59_v0 = vld [vmem:[%s1449_s2] sm:$0x3] }
   0xf   :  { %1063 = vmatprep.subr.msk.bf16.mxu0 %vm100_vm0, %v59_v0  ;;  %v102_v1 = vsel %vm100_vm0, %v59_v0, 0  ;;  %v1074_v2 = vld [vmem:[%s1447_s0] sm:$0xff]   ;;  %v1075_v3 = vld [vmem:[%s1447_s0 + $0x8] sm:$0xff]   ;;  %v1077_v16 = vld [vmem:[%s1447_s0 + $0x10] sm:$0xff]   ;;  %v1159_v18 = vmov 0.0   ;;  %vm1160_vm2 = vmmov 0  }
  0x10   :  { %978 = vmatpush3.bf16.msra.mxu0 %v102_v1  ;;  %979 = vmatprep.mubr.msk.bf16.mxu0 %vm87_vm1, %v1074_v2  ;;  %v1232_v5 = vld [vmem:[%s1450_s3] ss:$0 sm:$0xff]  ;;  %v1248_v15 = vld [vmem:[#allocation4 + $0x8] sm:$0xff]   ;;  %v1078_v17 = vld [vmem:[%s1447_s0 + $0x18] sm:$0xff]   ;;  %s1161_s0 = smov 96   ;;  %vm208_vm3 = vcmask 261120  }
  0x11   :  { %v1238_v8 = vld [vmem:[%s1451_s4] ss:$0 sm:$0xff]  ;;  %987 = vmatprep.subr.bf16.mxu0 %v1159_v18  ;;  %995 = vmatprep.subr.bf16.mxu1 %v1159_v18  ;;  %s1163_s11 = smov [#allocation7]  }
  0x12   :  { %v1243_v10 = vld [vmem:[%s1452_s5] ss:$0 sm:$0xff]  ;;  %996 = vmatpush3.bf16.msra.mxu1 %v1248_v15  ;;  %999 = vmatprep.mubr.msk.bf16.mxu1 %vm1160_vm2, %v1159_v18  ;;  %s1162_s5 = smov 32  }
  0x13   :  { %980 = vmatmul.mubr.msk.bf16.vlgmr.msra.gmra.mxu0 %vm87_vm1, %v1075_v3  ;;  %v1260_v19 = vld [vmem:[#allocation4] sm:$0xff]   ;;  %997 = vmatprep.subr.bf16.mxu1 %v1159_v18 }
  0x14   :  { %988 = vmatpush3.bf16.msra.mxu0 %v1248_v15  ;;  %983 = vmatprep.mubr.msk.bf16.mxu0 %vm87_vm1, %v1077_v16 }
  0x15   :  { %989 = vmatprep.subr.bf16.mxu0 %v1159_v18 }
  0x16   :  { %998 = vmatpush3.bf16.msra.mxu1 %v1260_v19 }
  0x17   :  { %1011 = vmatprep.subr.bf16.mxu1 %v1159_v18 }
  0x18   :  { %990 = vmatpush3.bf16.msra.mxu0 %v1260_v19 }
  0x19   :  { %1003 = vmatprep.subr.bf16.mxu0 %v1159_v18 }
  0x1b   :  { %984 = vmatmul.mubr.msk.bf16.gmra.mxu0 %vm87_vm1, %v1078_v17 }
  0x1c   :  { %991 = vmatprep.mubr.msk.bf16.mxu0 %vm1160_vm2, %v1159_v18 }
  0xd3   :  { %v1227_v4 = vpop.f32.mrf.mxu0 }
  0xd4   :  { %v147_v51 = vadd.f32 %v1227_v4, %v1232_v5 }
  0xd5   :  { %v138_v6 = vpop.f32.mrf.mxu0 }
  0xd6   :  { %v139_v7 = vadd.f32 %v1232_v5, %v138_v6 }
  0xd7   :  { %v1287_v25 = vpop.f32.mrf.mxu0 }
  0xd8   :  { %1080 = vtanh.f32 %v139_v7  ;;  %v150_v7 = vadd.f32 %v1287_v25, %v1232_v5 }
  0xd9   :  { %v141_v26 = vpop.f32.mrf.mxu0 }
  0xda   :  { %v142_v31 = vadd.f32 %v1232_v5, %v141_v26 }
  0xdb   :  { %v1289_v27 = vpop.f32.mrf.mxu0 }
  0xdd   :  { %v1291_v28 = vpop.f32.mrf.mxu0 }
  0xdf   :  { %v1293_v29 = vpop.f32.mrf.mxu0 }
  0xe1   :  { %v1295_v30 = vpop.f32.mrf.mxu0 }
  0xe5   :  { %v1081_v9 = vpop.eup %1080 }
  0xe6   :  { %v185_v11 = vmul.f32 %v1081_v9, %v1238_v8 }
  0xe8   :  { %v192_v12 = vadd.f32 %v1243_v10, %v185_v11 }
  0xea   :  { %194 = vrot.lane.b32.xlu0 %v192_v12, %s1157_s30 }
 0x15c   :  { %v195_v13 = vpop.permute.xlu0 %194 }
 0x15d   :  { %v197_v14 = vmul.f32 %v195_v13, %v192_v12 }
 0x15f   :  { %1082 = vtanh.f32 %v197_v14 }
 0x16c   :  { %v1083_v20 = vpop.eup %1082 }
 0x16d   :  { %200 = vrot.lane.b32.xlu0 %v1083_v20, %s1161_s0 }
 0x171   :  { %274 = vrot.lane.b32.xlu0 %v197_v14, %s1162_s5 }
 0x1df   :  { %v201_v21 = vpop.permute.xlu0 %200 }
 0x1e0   :  { %v1275_v22 = vmul.f32 %v201_v21, %v192_v12 }
 0x1e2   :  { %v210_v23 = vpack.c.bf16 %v1275_v22, %v1275_v22 }
 0x1e3   :  { %v275_v42 = vpop.permute.xlu0 %274 }
 0x1e4   :  { %213 = vrot.lane.b32.xlu1 %v210_v23, %s1162_s5 }
 0x256   :  { %v214_v24 = vpop.permute.xlu1 %213 }
 0x257   :  { %992 = vmatmul.mubr.msk.bf16.vlgmr.msra.gmra.mxu0 %vm208_vm3, %v214_v24 }
 0x258   :  { %1004 = vmatpush3.bf16.msra.mxu0 %v1248_v15  ;;  %1007 = vmatprep.mubr.msk.bf16.mxu0 %vm1160_vm2, %v1159_v18 }
 0x259   :  { %1005 = vmatprep.subr.bf16.mxu0 %v1159_v18 }
 0x25c   :  { %1006 = vmatpush3.bf16.msra.mxu0 %v1260_v19 }
 0x25d   :  { %1019 = vmatprep.subr.bf16.mxu0 %v1159_v18 }
 0x317   :  { %v264_v32 = vpop.f32.mrf.mxu0 }
 0x318   :  { %v265_v33 = vadd.f32 %v264_v32, %v142_v31 }
 0x319   :  { %v993_v34 = vpop.f32.mrf.mxu0 }
 0x31a   :  { %1084 = vtanh.f32 %v265_v33 }
 0x31b   :  { %v267_v35 = vpop.f32.mrf.mxu0 }
 0x31d   :  { %v994_v36 = vpop.f32.mrf.mxu0 }
 0x31e   :  { %v155_v36 = vadd.f32 %v1232_v5, %v1291_v28 }
 0x327   :  { %v1085_v37 = vpop.eup %1084 }
 0x328   :  { %v271_v38 = vmul.f32 %v1085_v37, %v1238_v8 }
 0x32a   :  { %v272_v39 = vadd.f32 %v1243_v10, %v271_v38 }
 0x32c   :  { %279 = vrot.lane.b32.xlu1 %v272_v39, %s1157_s30  ;;  %v277_v43 = vmul.f32 %v275_v42, %v272_v39 }
 0x39e   :  { %v280_v40 = vpop.permute.xlu1 %279 }
 0x39f   :  { %v282_v41 = vmul.f32 %v280_v40, %v272_v39 }
 0x3a1   :  { %284 = vrot.lane.b32.xlu1 %v282_v41, %s1162_s5 }
 0x413   :  { %v285_v44 = vpop.permute.xlu1 %284 }
 0x414   :  { %v287_v45 = vadd.f32 %v285_v44, %v277_v43 }
 0x416   :  { %1086 = vtanh.f32 %v287_v45 }
 0x423   :  { %v1087_v46 = vpop.eup %1086 }
 0x424   :  { %290 = vrot.lane.b32.xlu0 %v1087_v46, %s1157_s30 }
 0x496   :  { %v291_v47 = vpop.permute.xlu0 %290 }
 0x497   :  { %v1303_v48 = vmul.f32 %v291_v47, %v272_v39 }
 0x499   :  { %v299_v49 = vpack.c.bf16 %v1303_v48, %v1303_v48 }
 0x49b   :  { %302 = vrot.lane.b32.xlu1 %v299_v49, %s1162_s5 }
 0x50d   :  { %v303_v50 = vpop.permute.xlu1 %302 }
 0x50e   :  { %1000 = vmatmul.mubr.msk.bf16.vlgmr.msra.gmra.mxu1 %vm208_vm3, %v303_v50 }
 0x50f   :  { %1012 = vmatpush3.bf16.msra.mxu1 %v1248_v15  ;;  %1015 = vmatprep.mubr.msk.bf16.mxu1 %vm1160_vm2, %v1159_v18 }
 0x510   :  { %1013 = vmatprep.subr.bf16.mxu1 %v1159_v18 }
 0x513   :  { %1014 = vmatpush3.bf16.msra.mxu1 %v1260_v19 }
 0x514   :  { %1027 = vmatprep.subr.bf16.mxu1 %v1159_v18 }
 0x5ce   :  { %v341_v52 = vpop.f32.mrf.mxu1 }
 0x5cf   :  { %v342_v53 = vadd.f32 %v341_v52, %v147_v51 }
 0x5d0   :  { %v1001_v54 = vpop.f32.mrf.mxu1 }
 0x5d1   :  { %1088 = vtanh.f32 %v342_v53 }
 0x5d2   :  { %v344_v55 = vpop.f32.mrf.mxu1 }
 0x5d3   :  { %v158_v55 = vadd.f32 %v1232_v5, %v1295_v30 }
 0x5d4   :  { %v1002_v56 = vpop.f32.mrf.mxu1 }
 0x5de   :  { %v1089_v57 = vpop.eup %1088 }
 0x5df   :  { %v348_v58 = vmul.f32 %v1089_v57, %v1238_v8 }
 0x5e1   :  { %v349_v59 = vadd.f32 %v1243_v10, %v348_v58 }
 0x5e3   :  { %352 = vrot.lane.b32.xlu0 %v349_v59, %s1157_s30  ;;  %v350_v62 = vmul.f32 %v349_v59, %v287_v45 }
 0x655   :  { %v353_v60 = vpop.permute.xlu0 %352 }
 0x656   :  { %v355_v61 = vmul.f32 %v353_v60, %v349_v59 }
 0x658   :  { %357 = vrot.lane.b32.xlu1 %v355_v61, %s1162_s5 }
 0x6ca   :  { %v358_v63 = vpop.permute.xlu1 %357 }
 0x6cb   :  { %v360_v0 = vadd.f32 %v358_v63, %v350_v62 }
 0x6cd   :  { %1090 = vtanh.f32 %v360_v0 }
 0x6da   :  { %v1091_v1 = vpop.eup %1090 }
 0x6db   :  { %363 = vrot.lane.b32.xlu0 %v1091_v1, %s1157_s30 }
 0x74d   :  { %v364_v2 = vpop.permute.xlu0 %363 }
 0x74e   :  { %v1322_v3 = vmul.f32 %v364_v2, %v349_v59 }
 0x750   :  { %v372_v4 = vpack.c.bf16 %v1322_v3, %v1322_v3 }
 0x752   :  { %375 = vrot.lane.b32.xlu1 %v372_v4, %s1162_s5 }
 0x7c4   :  { %v376_v6 = vpop.permute.xlu1 %375 }
 0x7c5   :  { %1008 = vmatmul.mubr.msk.bf16.vlgmr.msra.gmra.mxu0 %vm208_vm3, %v376_v6 }
 0x7c6   :  { %1020 = vmatpush3.bf16.msra.mxu0 %v1248_v15  ;;  %1023 = vmatprep.mubr.msk.bf16.mxu0 %vm1160_vm2, %v1159_v18 }
 0x7c7   :  { %1021 = vmatprep.subr.bf16.mxu0 %v1159_v18 }
 0x7ca   :  { %1022 = vmatpush3.bf16.msra.mxu0 %v1260_v19 }
 0x7cb   :  { %1035 = vmatprep.subr.bf16.mxu0 %v1159_v18 }
 0x885   :  { %v414_v9 = vpop.f32.mrf.mxu0 }
 0x886   :  { %v415_v11 = vadd.f32 %v414_v9, %v150_v7  ;;  %v163_v9 = vadd.f32 %v1289_v27, %v1232_v5 }
 0x887   :  { %v1009_v12 = vpop.f32.mrf.mxu0 }
 0x888   :  { %1092 = vtanh.f32 %v415_v11 }
 0x889   :  { %v417_v13 = vpop.f32.mrf.mxu0 }
 0x88b   :  { %v1010_v14 = vpop.f32.mrf.mxu0 }
 0x895   :  { %v1093_v16 = vpop.eup %1092 }
 0x896   :  { %v421_v17 = vmul.f32 %v1093_v16, %v1238_v8 }
 0x898   :  { %v422_v20 = vadd.f32 %v1243_v10, %v421_v17 }
 0x89a   :  { %425 = vrot.lane.b32.xlu0 %v422_v20, %s1157_s30  ;;  %v423_v24 = vmul.f32 %v422_v20, %v360_v0 }
 0x90c   :  { %v426_v21 = vpop.permute.xlu0 %425 }
 0x90d   :  { %v428_v23 = vmul.f32 %v426_v21, %v422_v20 }
 0x90f   :  { %430 = vrot.lane.b32.xlu1 %v428_v23, %s1162_s5 }
 0x981   :  { %v431_v26 = vpop.permute.xlu1 %430 }
 0x982   :  { %v433_v25 = vadd.f32 %v431_v26, %v423_v24 }
 0x984   :  { %1094 = vtanh.f32 %v433_v25 }
 0x991   :  { %v1095_v31 = vpop.eup %1094 }
 0x992   :  { %436 = vrot.lane.b32.xlu0 %v1095_v31, %s1157_s30 }
 0xa04   :  { %v437_v32 = vpop.permute.xlu0 %436 }
 0xa05   :  { %v1341_v33 = vmul.f32 %v437_v32, %v422_v20 }
 0xa07   :  { %v445_v34 = vpack.c.bf16 %v1341_v33, %v1341_v33 }
 0xa09   :  { %448 = vrot.lane.b32.xlu1 %v445_v34, %s1162_s5 }
 0xa7b   :  { %v449_v35 = vpop.permute.xlu1 %448 }
 0xa7c   :  { %1016 = vmatmul.mubr.msk.bf16.vlgmr.msra.gmra.mxu1 %vm208_vm3, %v449_v35 }
 0xa7d   :  { %1028 = vmatpush3.bf16.msra.mxu1 %v1248_v15  ;;  %1031 = vmatprep.mubr.msk.bf16.mxu1 %vm1160_vm2, %v1159_v18 }
 0xa7e   :  { %1029 = vmatprep.subr.bf16.mxu1 %v1159_v18 }
 0xa81   :  { %1030 = vmatpush3.bf16.msra.mxu1 %v1260_v19 }
 0xb3c   :  { %v487_v37 = vpop.f32.mrf.mxu1 }
 0xb3d   :  { %v488_v38 = vadd.f32 %v487_v37, %v155_v36  ;;  %v166_v37 = vadd.f32 %v1293_v29, %v1232_v5 }
 0xb3e   :  { %v1017_v39 = vpop.f32.mrf.mxu1 }
 0xb3f   :  { %1096 = vtanh.f32 %v488_v38 }
 0xb40   :  { %v490_v40 = vpop.f32.mrf.mxu1 }
 0xb42   :  { %v1018_v41 = vpop.f32.mrf.mxu1 }
 0xb4c   :  { %v1097_v42 = vpop.eup %1096 }
 0xb4d   :  { %v494_v43 = vmul.f32 %v1097_v42, %v1238_v8 }
 0xb4f   :  { %v495_v44 = vadd.f32 %v1243_v10, %v494_v43 }
 0xb51   :  { %498 = vrot.lane.b32.xlu0 %v495_v44, %s1157_s30  ;;  %v496_v47 = vmul.f32 %v495_v44, %v433_v25 }
 0xbc3   :  { %v499_v45 = vpop.permute.xlu0 %498 }
 0xbc4   :  { %v501_v46 = vmul.f32 %v499_v45, %v495_v44 }
 0xbc6   :  { %503 = vrot.lane.b32.xlu1 %v501_v46, %s1162_s5 }
 0xc38   :  { %v504_v49 = vpop.permute.xlu1 %503 }
 0xc39   :  { %v506_v28 = vadd.f32 %v504_v49, %v496_v47  ;;  %v748_v49 = vld [vmem:[%s1453_s6 + $0x18] sm:$0xff] }
 0xc3a   :  { %1043 = vmatprep.subr.mxu1 %v748_v49 }
 0xc3b   :  { %1098 = vtanh.f32 %v506_v28 }
 0xc48   :  { %v1099_v50 = vpop.eup %1098 }
 0xc49   :  { %509 = vrot.lane.b32.xlu0 %v1099_v50, %s1157_s30 }
 0xcbb   :  { %v510_v51 = vpop.permute.xlu0 %509 }
 0xcbc   :  { %v1359_v52 = vmul.f32 %v510_v51, %v495_v44 }
 0xcbe   :  { %v518_v53 = vpack.c.bf16 %v1359_v52, %v1359_v52 }
 0xcc0   :  { %521 = vrot.lane.b32.xlu1 %v518_v53, %s1162_s5 }
 0xd32   :  { %v522_v54 = vpop.permute.xlu1 %521 }
 0xd33   :  { %1024 = vmatmul.mubr.msk.bf16.vlgmr.msra.gmra.mxu0 %vm208_vm3, %v522_v54 }
 0xd34   :  { %1036 = vmatpush3.bf16.msra.mxu0 %v1248_v15  ;;  %1039 = vmatprep.mubr.msk.bf16.mxu0 %vm1160_vm2, %v1159_v18 }
 0xd35   :  { %1037 = vmatprep.subr.bf16.mxu0 %v1159_v18 }
 0xd38   :  { %1038 = vmatpush3.bf16.msra.mxu0 %v1260_v19 }
 0xdf3   :  { %v560_v56 = vpop.f32.mrf.mxu0 }
 0xdf4   :  { %v561_v57 = vadd.f32 %v560_v56, %v158_v55 }
 0xdf5   :  { %v1025_v58 = vpop.f32.mrf.mxu0 }
 0xdf6   :  { %1100 = vtanh.f32 %v561_v57 }
 0xdf7   :  { %v563_v59 = vpop.f32.mrf.mxu0 }
 0xdf9   :  { %v1026_v60 = vpop.f32.mrf.mxu0 }
 0xe03   :  { %v1101_v61 = vpop.eup %1100 }
 0xe04   :  { %v567_v62 = vmul.f32 %v1101_v61, %v1238_v8 }
 0xe06   :  { %v568_v15 = vadd.f32 %v1243_v10, %v567_v62 }
 0xe08   :  { %571 = vrot.lane.b32.xlu0 %v568_v15, %s1157_s30  ;;  %v569_v19 = vmul.f32 %v568_v15, %v506_v28  ;;  %v746_v28 = vld [vmem:[%s1453_s6 + $0x8] sm:$0xff] }
 0xe7a   :  { %v572_v63 = vpop.permute.xlu0 %571 }
 0xe7b   :  { %v574_v18 = vmul.f32 %v572_v63, %v568_v15 }
 0xe7d   :  { %576 = vrot.lane.b32.xlu1 %v574_v18, %s1162_s5 }
 0xeef   :  { %v577_v0 = vpop.permute.xlu1 %576 }
 0xef0   :  { %v579_v30 = vadd.f32 %v577_v0, %v569_v19  ;;  %v930_v19 = vld [vmem:[%s1454_s7] ss:$0 sm:$0xff]  ;;  %s898_s7 = sshll.u32 %s1163_s11, 4  ;;  %s899_s7 = int_to_ptr.vmem [resolvable:$true] %s898_s7 }
 0xef1   :  { %s1132_s12 = scalar_lea.vmem %s899_s7, 1024  ;;  %p1137_p6 = scmp.lt.s32.totalorder %s899_s7, %s899_s7 }
 0xef2   :  { %1102 = vtanh.f32 %v579_v30  ;;  %p1133_p5 = scmp.ne.s32.totalorder %s899_s7, %s1132_s12  ;;  %p1138_p7 = scmp.lt.s32.totalorder %s1132_s12, %s1132_s12 }
 0xef4   :  { %p1139_p8 = por %p1138_p7, %p1137_p6 }
 0xef6   :  { %p1140_p9 = pnand %p1139_p8, %p1133_p5 }
 0xeff   :  { %v1103_v1 = vpop.eup %1102 }
 0xf00   :  { %582 = vrot.lane.b32.xlu0 %v1103_v1, %s1157_s30 }
 0xf72   :  { %v583_v2 = vpop.permute.xlu0 %582 }
 0xf73   :  { %v1377_v4 = vmul.f32 %v583_v2, %v568_v15 }
 0xf75   :  { %v591_v6 = vpack.c.bf16 %v1377_v4, %v1377_v4 }
 0xf77   :  { %594 = vrot.lane.b32.xlu1 %v591_v6, %s1162_s5 }
 0xfe9   :  { %v595_v7 = vpop.permute.xlu1 %594 }
 0xfea   :  { %1032 = vmatmul.mubr.msk.bf16.vlgmr.msra.gmra.mxu1 %vm208_vm3, %v595_v7 }
 0xfeb   :  { %1044 = vmatpush3.msra.mxu1 %v748_v49 }
0x10aa   :  { %v633_v11 = vpop.f32.mrf.mxu1 }
0x10ab   :  { %v634_v12 = vadd.f32 %v633_v11, %v163_v9 }
0x10ac   :  { %v1033_v13 = vpop.f32.mrf.mxu1 }
0x10ad   :  { %1104 = vtanh.f32 %v634_v12 }
0x10ae   :  { %v636_v14 = vpop.f32.mrf.mxu1 }
0x10b0   :  { %v1034_v16 = vpop.f32.mrf.mxu1 }
0x10ba   :  { %v1105_v17 = vpop.eup %1104 }
0x10bb   :  { %v640_v20 = vmul.f32 %v1105_v17, %v1238_v8 }
0x10bd   :  { %v641_v21 = vadd.f32 %v1243_v10, %v640_v20 }
0x10bf   :  { %644 = vrot.lane.b32.xlu0 %v641_v21, %s1157_s30  ;;  %v642_v26 = vmul.f32 %v641_v21, %v579_v30 }
0x1131   :  { %v645_v23 = vpop.permute.xlu0 %644 }
0x1132   :  { %v647_v24 = vmul.f32 %v645_v23, %v641_v21 }
0x1134   :  { %649 = vrot.lane.b32.xlu1 %v647_v24, %s1162_s5 }
0x11a6   :  { %v650_v25 = vpop.permute.xlu1 %649 }
0x11a7   :  { %v652_v27 = vadd.f32 %v650_v25, %v642_v26 }
0x11a9   :  { %1106 = vtanh.f32 %v652_v27 }
0x11b6   :  { %v1107_v31 = vpop.eup %1106 }
0x11b7   :  { %655 = vrot.lane.b32.xlu0 %v1107_v31, %s1157_s30 }
0x1229   :  { %v656_v32 = vpop.permute.xlu0 %655 }
0x122a   :  { %v658_v34 = vmul.f32 %v656_v32, %v641_v21 }
0x122c   :  { %v664_v35 = vpack.c.bf16 %v658_v34, %v658_v34 }
0x122e   :  { %667 = vrot.lane.b32.xlu1 %v664_v35, %s1162_s5 }
0x12a0   :  { %v668_v36 = vpop.permute.xlu1 %667 }
0x12a1   :  { %1040 = vmatmul.mubr.msk.bf16.vlgmr.msra.gmra.mxu0 %vm208_vm3, %v668_v36 }
0x1361   :  { %v706_v38 = vpop.f32.mrf.mxu0 }
0x1362   :  { %v707_v39 = vadd.f32 %v706_v38, %v166_v37 }
0x1363   :  { %v1041_v40 = vpop.f32.mrf.mxu0 }
0x1364   :  { %1108 = vtanh.f32 %v707_v39 }
0x1365   :  { %v709_v41 = vpop.f32.mrf.mxu0 }
0x1367   :  { %v1042_v42 = vpop.f32.mrf.mxu0 }
0x1371   :  { %v1109_v43 = vpop.eup %1108 }
0x1372   :  { %v713_v44 = vmul.f32 %v1109_v43, %v1238_v8 }
0x1374   :  { %v714_v45 = vadd.f32 %v1243_v10, %v713_v44 }
0x1376   :  { %717 = vrot.lane.b32.xlu0 %v714_v45, %s1157_s30  ;;  %v715_v5 = vmul.f32 %v714_v45, %v652_v27 }
0x13e8   :  { %v718_v46 = vpop.permute.xlu0 %717 }
0x13e9   :  { %v720_v47 = vmul.f32 %v718_v46, %v714_v45 }
0x13eb   :  { %722 = vrot.lane.b32.xlu1 %v720_v47, %s1162_s5 }
0x13ef   :  { %205 = vrot.lane.b32.xlu1 %v1275_v22, %s1162_s5 }
0x13f3   :  { %368 = vrot.lane.b32.xlu1 %v1322_v3, %s1162_s5  ;;  %v747_v3 = vld [vmem:[%s1453_s6 + $0x10] sm:$0xff] }
0x13f4   :  { %1045 = vmatprep.subr.mxu1 %v747_v3 }
0x13f5   :  { %1046 = vmatpush3.msra.mxu1 %v747_v3 }
0x13f6   :  { %1047 = vmatprep.subr.mxu1 %v746_v28 }
0x13f7   :  { %514 = vrot.lane.b32.xlu1 %v1359_v52, %s1162_s5  ;;  %v745_v52 = vld [vmem:[%s1453_s6] sm:$0xff]  ;;  %1048 = vmatpush3.msra.mxu1 %v746_v28 }
0x13f8   :  { %1049 = vmatprep.subr.mxu1 %v745_v52 }
0x13f9   :  { %1050 = vmatpush3.msra.mxu1 %v745_v52 }
0x13fb   :  { %660 = vrot.lane.b32.xlu1 %v658_v34, %s1162_s5 }
0x145d   :  { %v723_v8 = vpop.permute.xlu1 %722 }
0x145e   :  { %v725_v10 = vadd.f32 %v723_v8, %v715_v5 }
0x1460   :  { %1110 = vtanh.f32 %v725_v10 }
0x1461   :  { %v206_v29 = vpop.permute.xlu1 %205 }
0x1462   :  { %209 = vst.msk [vmem:[#allocation3] sm:$0xff] %vm208_vm3, %v206_v29 }
0x1465   :  { %v369_v22 = vpop.permute.xlu1 %368 }
0x1466   :  { %371 = vst.msk [vmem:[#allocation3 + $0x10] sm:$0xff] %vm208_vm3, %v369_v22 }
0x1469   :  { %v515_v50 = vpop.permute.xlu1 %514  ;;  %v737_v51 = vld [vmem:[#allocation3] sm:$0xff] }
0x146a   :  { %517 = vst.msk [vmem:[#allocation3 + $0x20] sm:$0xff] %vm208_vm3, %v515_v50  ;;  %1051 = vmatprep.mubr.msk.f32.mxu1 %vm208_vm3, %v737_v51 }
0x146d   :  { %v1111_v53 = vpop.eup %1110  ;;  %v661_v54 = vpop.permute.xlu1 %660 }
0x146e   :  { %663 = vst.msk [vmem:[#allocation3 + $0x30] sm:$0xff] %vm208_vm3, %v661_v54  ;;  %728 = vrot.lane.b32.xlu0 %v1111_v53, %s1157_s30 }
0x1471   :  { %v741_v61 = vld [vmem:[#allocation3 + $0x20] sm:$0xff] }
0x1472   :  { %295 = vrot.lane.b32.xlu0 %v1303_v48, %s1162_s5  ;;  %v739_v48 = vld [vmem:[#allocation3 + $0x10] sm:$0xff] }
0x1475   :  { %v743_v15 = vld [vmem:[#allocation3 + $0x30] sm:$0xff] }
0x1476   :  { %441 = vrot.lane.b32.xlu0 %v1341_v33, %s1162_s5 }
0x147a   :  { %587 = vrot.lane.b32.xlu0 %v1377_v4, %s1162_s5 }
0x14e0   :  { %v729_v55 = vpop.permute.xlu0 %728 }
0x14e1   :  { %v731_v56 = vmul.f32 %v729_v55, %v714_v45 }
0x14e3   :  { %733 = vrot.lane.b32.xlu0 %v731_v56, %s1162_s5 }
0x14e4   :  { %v296_v57 = vpop.permute.xlu0 %295 }
0x14e5   :  { %298 = vst.msk [vmem:[#allocation3 + $0x8] sm:$0xff] %vm208_vm3, %v296_v57 }
0x14e8   :  { %v442_v58 = vpop.permute.xlu0 %441 }
0x14e9   :  { %444 = vst.msk [vmem:[#allocation3 + $0x18] sm:$0xff] %vm208_vm3, %v442_v58 }
0x14ec   :  { %v588_v59 = vpop.permute.xlu0 %587  ;;  %v738_v60 = vld [vmem:[#allocation3 + $0x8] sm:$0xff] }
0x14ed   :  { %590 = vst.msk [vmem:[#allocation3 + $0x28] sm:$0xff] %vm208_vm3, %v588_v59  ;;  %1052 = vmatmul.mubr.msk.f32.vlgmr.msra.gmra.mxu1 %vm208_vm3, %v738_v60 }
0x14ee   :  { %1054 = vmatprep.mubr.msk.f32.mxu1 %vm208_vm3, %v739_v48 }
0x14f0   :  { %v740_v33 = vld [vmem:[#allocation3 + $0x18] sm:$0xff] }
0x14f1   :  { %1055 = vmatmul.mubr.msk.f32.gmra.mxu1 %vm208_vm3, %v740_v33 }
0x14f2   :  { %1057 = vmatprep.mubr.msk.f32.mxu1 %vm208_vm3, %v741_v61 }
0x14f4   :  { %v742_v62 = vld [vmem:[#allocation3 + $0x28] sm:$0xff] }
0x14f5   :  { %1058 = vmatmul.mubr.msk.f32.gmra.mxu1 %vm208_vm3, %v742_v62 }
0x14f6   :  { %1060 = vmatprep.mubr.msk.f32.mxu1 %vm208_vm3, %v743_v15 }
0x1555   :  { %v734_v63 = vpop.permute.xlu0 %733 }
0x1556   :  { %736 = vst.msk [vmem:[#allocation3 + $0x38] sm:$0xff] %vm208_vm3, %v734_v63 }
0x155d   :  { %v744_v18 = vld [vmem:[#allocation3 + $0x38] sm:$0xff] }
0x155e   :  { %1061 = vmatmul.mubr.msk.f32.gmra.mxu1 %vm208_vm3, %v744_v18 }
0x15ad   :  { %v1053_v0 = vpop.f32.mrf.mxu1 }
0x15ae   :  { %v852_v30 = vadd.f32 %v1053_v0, %v930_v19 }
0x15af   :  { %v846_v1 = vpop.f32.mrf.mxu1 }
0x15b0   :  { %886 = vst [vmem:[#allocation7 + $0x8] sm:$0xff] %v852_v30  ;;  %v847_v2 = vadd.f32 %v930_v19, %v846_v1 }
0x15b1   :  { %v1056_v4 = vpop.f32.mrf.mxu1 }
0x15b2   :  { %885 = vst [vmem:[#allocation7] sm:$0xff] %v847_v2  ;;  %v862_v6 = vadd.f32 %v1056_v4, %v930_v19 }
0x15b3   :  { %v856_v7 = vpop.f32.mrf.mxu1 }
0x15b4   :  { %888 = vst [vmem:[#allocation7 + $0x18] sm:$0xff] %v862_v6  ;;  %v857_v9 = vadd.f32 %v930_v19, %v856_v7 }
0x15b5   :  { %v1059_v11 = vpop.f32.mrf.mxu1 }
0x15b6   :  { %887 = vst [vmem:[#allocation7 + $0x10] sm:$0xff] %v857_v9  ;;  %v872_v12 = vadd.f32 %v1059_v11, %v930_v19 }
0x15b7   :  { %v866_v13 = vpop.f32.mrf.mxu1 }
0x15b8   :  { %890 = vst [vmem:[#allocation7 + $0x28] sm:$0xff] %v872_v12  ;;  %v867_v14 = vadd.f32 %v930_v19, %v866_v13 }
0x15ba   :  { %889 = vst [vmem:[#allocation7 + $0x20] sm:$0xff] %v867_v14 }
0x161e   :  { %v1062_v16 = vpop.f32.mrf.mxu1 }
0x161f   :  { %v882_v17 = vadd.f32 %v1062_v16, %v930_v19 }
0x1620   :  { %v876_v20 = vpop.f32.mrf.mxu1 }
0x1621   :  { %892 = vst [vmem:[#allocation7 + $0x38] sm:$0xff] %v882_v17  ;;  %v877_v21 = vadd.f32 %v930_v19, %v876_v20 }
0x1623   :  { %891 = vst [vmem:[#allocation7 + $0x30] sm:$0xff] %v877_v21 }
0x1624   :  { %1143 = shalt.err (!%p1140_p9)
}
0x1625   :  { %s1164_s13 = smov 128   ;;  %s1165_s14 = smov 8  }
0x1626   :  { %904 = dma.vmem_to_hbm [thread:$0]  %s899_s7, 1024, %s1455_s8, [#allocation6], %s1164_s13, %s1164_s13, %s1165_s14  }
0x1627   :  { %1154 = dma.done.wait [#allocation6], 1024  }
0x1628   :  { %1155 = vsyncadd [#allocation6], 4294966272 }
0x1629   :  { %908 = vsyncpa [#allocation5], 1 }
0x162a   :  { %909 = vsyncpa [#allocation6], 1 }

</bundles_post_ra>
